<compile_context>
chip_gen: v5e
topology: v5e:2x2
jax: 0.10.0
libtpu: 0.0.40
codegen_flags: <defaults>
</compile_context>

<pallas_src>
import jax
import jax.numpy as jnp
from jax.experimental import pallas as pl
from jax.experimental.pallas import tpu as pltpu


def _round_up(a: int, b: int) -> int:
    return ((a + b - 1) // b) * b


def _geglu_kernel(x_ref, wv_ref, wg_ref, bv_ref, bg_ref, o_ref):
    """One (tm, tn) output tile of GEGLU: value proj, gate proj, erf-GELU, product."""
    x = x_ref[...]  # native dtype straight into the MXU

    v = jnp.dot(x, wv_ref[...], preferred_element_type=jnp.float32)
    v = v + bv_ref[...].astype(jnp.float32)

    g = jnp.dot(x, wg_ref[...], preferred_element_type=jnp.float32)
    g = g + bg_ref[...].astype(jnp.float32)

    # Exact GELU (erf-based), matching torch.nn.functional.gelu default.
    inv_sqrt2 = jnp.float32(0.7071067811865476)
    gelu_g = 0.5 * g * (1.0 + jax.lax.erf(g * inv_sqrt2))

    o_ref[...] = (v * gelu_g).astype(o_ref.dtype)


def geglu(x, w_proj, b_proj, *, tm_desired=256, tn_desired=512):
    """GEGLU forward.

    x:       (batch, seq, dim_in)
    w_proj:  (2*dim_out, dim_in)   -- PyTorch nn.Linear weight layout
    b_proj:  (2*dim_out,)          -- PyTorch nn.Linear bias
    returns: (batch, seq, dim_out)
    """
    b, s, dim_in = x.shape
    two_dout, din_w = w_proj.shape
    assert din_w == dim_in
    dim_out = two_dout // 2

    m = b * s

    # ---- tile selection (8-aligned rows, 128-aligned lanes) ----------------
    tm = min(tm_desired, _round_up(m, 8))
    tn = min(tn_desired, _round_up(dim_out, 128))
    m_pad = _round_up(m, tm)
    n_pad = _round_up(dim_out, tn)
    grid = (m_pad // tm, n_pad // tn)

    # ---- one-time parameter prep (hoist out of the hot path in real use) ---
    w_t = w_proj.T                       # (dim_in, 2*dim_out)
    wv = w_t[:, :dim_out]                # value half
    wg = w_t[:, dim_out:]                # gate half
    bv = b_proj[:dim_out].reshape(1, dim_out)
    bg = b_proj[dim_out:].reshape(1, dim_out)
    if n_pad != dim_out:
        pad_n = ((0, 0), (0, n_pad - dim_out))
        wv = jnp.pad(wv, pad_n)
        wg = jnp.pad(wg, pad_n)
        bv = jnp.pad(bv, pad_n)
        bg = jnp.pad(bg, pad_n)

    # ---- activation prep ----------------------------------------------------
    x2d = x.reshape(m, dim_in)
    if m_pad != m:
        x2d = jnp.pad(x2d, ((0, m_pad - m), (0, 0)))

    # ---- explicit VMEM budget: double-buffered tiles + headroom -------------
    xb = jnp.dtype(x.dtype).itemsize
    wb = jnp.dtype(w_proj.dtype).itemsize
    per_step_bytes = (tm * dim_in * xb            # x tile
                      + 2 * dim_in * tn * wb      # Wv + Wg tiles
                      + 2 * tn * wb               # bv + bg tiles
                      + tm * tn * xb)             # output tile
    vmem_limit = int(min(3 * per_step_bytes + (4 << 20), 96 << 20))

    out2d = pl.pallas_call(
        _geglu_kernel,
        out_shape=jax.ShapeDtypeStruct((m_pad, n_pad), x.dtype),
        grid_spec=pltpu.PrefetchScalarGridSpec(
            num_scalar_prefetch=0,
            grid=grid,
            in_specs=[
                pl.BlockSpec((tm, dim_in), lambda i, j: (i, 0)),   # x row tile
                pl.BlockSpec((dim_in, tn), lambda i, j: (0, j)),   # Wv column tile
                pl.BlockSpec((dim_in, tn), lambda i, j: (0, j)),   # Wg column tile
                pl.BlockSpec((1, tn), lambda i, j: (0, j)),        # bv tile
                pl.BlockSpec((1, tn), lambda i, j: (0, j)),        # bg tile
            ],
            out_specs=pl.BlockSpec((tm, tn), lambda i, j: (i, j)),
        ),
        compiler_params=pltpu.CompilerParams(
            dimension_semantics=("parallel", "parallel"),
            vmem_limit_bytes=vmem_limit,
        ),
    )(x2d, wv, wg, bv, bg)

    return out2d[:m, :dim_out].reshape(b, s, dim_out)


def geglu_reference(x, w_proj, b_proj):
    """Pure-JAX reference matching the PyTorch forward exactly."""
    h = jnp.einsum("bsd,od->bso", x, w_proj) + b_proj
    dim_out = w_proj.shape[0] // 2
    val, gate = h[..., :dim_out], h[..., dim_out:]
    return val * jax.nn.gelu(gate, approximate=False)


def _make_inputs(key, batch, seq, dim_in, dim_out, dtype=jnp.float32):
    kx, kw, kb = jax.random.split(key, 3)
    x = jax.random.normal(kx, (batch, seq, dim_in), dtype=dtype)
    bound = 1.0 / jnp.sqrt(jnp.float32(dim_in))
    w_proj = jax.random.uniform(kw, (2 * dim_out, dim_in),
                                minval=-bound, maxval=bound, dtype=dtype)
    b_proj = jax.random.uniform(kb, (2 * dim_out,),
                                minval=-bound, maxval=bound, dtype=dtype)
    return x, w_proj, b_proj


if __name__ == "__main__":
    key = jax.random.PRNGKey(0)
    k1, k2 = jax.random.split(key)

    # Small deterministic problem: batch=2, seq=8, dim_in=32, dim_out=32.
    batch, seq, dim_in, dim_out = 2, 8, 32, 32
    x, w_proj, b_proj = _make_inputs(k1, batch, seq, dim_in, dim_out)

    out = geglu(x, w_proj, b_proj)
    out = jax.block_until_ready(out)
    ref = geglu_reference(x, w_proj, b_proj)
    assert out.shape == (batch, seq, dim_out)
    assert jnp.allclose(out, ref, atol=1e-5, rtol=1e-5), "mismatch vs reference"

    # Ragged shapes (exercise M / dim_out padding path; no divisibility asserts).
    batch2, seq2, dim_in2, dim_out2 = 2, 7, 40, 48
    x2, w2, b2 = _make_inputs(k2, batch2, seq2, dim_in2, dim_out2)
    out2 = jax.block_until_ready(geglu(x2, w2, b2))
    ref2 = geglu_reference(x2, w2, b2)
    assert out2.shape == (batch2, seq2, dim_out2)
    assert jnp.allclose(out2, ref2, atol=1e-5, rtol=1e-5), "mismatch vs reference (ragged)"

    print("KERNEL_OK")
</pallas_src>

<mosaic_0001>
module attributes {stable_mosaic.version = 11 : i64} {
  func.func @_geglu_kernel(%arg0: i32, %arg1: i32, %arg2: memref<16x32xf32, #tpu.memory_space<vmem>>, %arg3: memref<32x128xf32, #tpu.memory_space<vmem>>, %arg4: memref<32x128xf32, #tpu.memory_space<vmem>>, %arg5: memref<1x128xf32, #tpu.memory_space<vmem>>, %arg6: memref<1x128xf32, #tpu.memory_space<vmem>>, %arg7: memref<16x128xf32, #tpu.memory_space<vmem>>) attributes {dimension_semantics = [#tpu.dimension_semantics<parallel>, #tpu.dimension_semantics<parallel>], iteration_bounds = array<i64: 1, 1>, scalar_prefetch = 0 : i64, scratch_operands = 0 : i64, tpu.core_type = #tpu.core_type<tc>, window_params = [{transform_indices = @transform_0, window_bounds = array<i64: 16, 32>}, {transform_indices = @transform_1, window_bounds = array<i64: 32, 128>}, {transform_indices = @transform_2, window_bounds = array<i64: 32, 128>}, {transform_indices = @transform_3, window_bounds = array<i64: 1, 128>}, {transform_indices = @transform_4, window_bounds = array<i64: 1, 128>}, {transform_indices = @transform_5, window_bounds = array<i64: 16, 128>}]} {
    %c0 = arith.constant 0 : index
    %c0_0 = arith.constant 0 : index
    %0 = vector.load %arg2[%c0, %c0_0] : memref<16x32xf32, #tpu.memory_space<vmem>>, vector<16x32xf32>
    %c0_1 = arith.constant 0 : index
    %c0_2 = arith.constant 0 : index
    %1 = vector.load %arg3[%c0_1, %c0_2] : memref<32x128xf32, #tpu.memory_space<vmem>>, vector<32x128xf32>
    %cst = arith.constant dense<0.000000e+00> : vector<16x128xf32>
    %2 = tpu.matmul %0, %1, %cst {dimension_numbers = #tpu.dot_dimension_numbers<[1], [0], [0], [1], [0, 0, 1, 1], [], []>} : vector<16x32xf32>, vector<32x128xf32>, vector<16x128xf32> -> vector<16x128xf32>
    %c0_3 = arith.constant 0 : index
    %c0_4 = arith.constant 0 : index
    %3 = vector.load %arg5[%c0_3, %c0_4] : memref<1x128xf32, #tpu.memory_space<vmem>>, vector<1x128xf32>
    %4 = vector.broadcast %3 : vector<1x128xf32> to vector<16x128xf32>
    %5 = arith.addf %2, %4 : vector<16x128xf32>
    %c0_5 = arith.constant 0 : index
    %c0_6 = arith.constant 0 : index
    %6 = vector.load %arg4[%c0_5, %c0_6] : memref<32x128xf32, #tpu.memory_space<vmem>>, vector<32x128xf32>
    %cst_7 = arith.constant dense<0.000000e+00> : vector<16x128xf32>
    %7 = tpu.matmul %0, %6, %cst_7 {dimension_numbers = #tpu.dot_dimension_numbers<[1], [0], [0], [1], [0, 0, 1, 1], [], []>} : vector<16x32xf32>, vector<32x128xf32>, vector<16x128xf32> -> vector<16x128xf32>
    %c0_8 = arith.constant 0 : index
    %c0_9 = arith.constant 0 : index
    %8 = vector.load %arg6[%c0_8, %c0_9] : memref<1x128xf32, #tpu.memory_space<vmem>>, vector<1x128xf32>
    %9 = vector.broadcast %8 : vector<1x128xf32> to vector<16x128xf32>
    %10 = arith.addf %7, %9 : vector<16x128xf32>
    %cst_10 = arith.constant 5.000000e-01 : f32
    %11 = vector.broadcast %cst_10 : f32 to vector<16x128xf32>
    %12 = arith.mulf %11, %10 : vector<16x128xf32>
    %cst_11 = arith.constant 0.707106769 : f32
    %13 = vector.broadcast %cst_11 : f32 to vector<16x128xf32>
    %14 = arith.mulf %10, %13 : vector<16x128xf32>
    %15 = math.erf %14 : vector<16x128xf32>
    %cst_12 = arith.constant 1.000000e+00 : f32
    %16 = vector.broadcast %cst_12 : f32 to vector<16x128xf32>
    %17 = arith.addf %16, %15 : vector<16x128xf32>
    %18 = arith.mulf %12, %17 : vector<16x128xf32>
    %19 = arith.mulf %5, %18 : vector<16x128xf32>
    %c0_13 = arith.constant 0 : index
    %c0_14 = arith.constant 0 : index
    %20 = vector.load %arg7[%c0_13, %c0_14] : memref<16x128xf32, #tpu.memory_space<vmem>>, vector<16x128xf32>
    tpu.vector_store %arg7[%c0_13, %c0_14], %19 {strides = array<i32>} : memref<16x128xf32, #tpu.memory_space<vmem>>, vector<16x128xf32>,
    return
  }
  func.func @transform_0(%arg0: i32, %arg1: i32) -> (i32, i32) {
    %c0_i32 = arith.constant 0 : i32
    %c0_i32_0 = arith.constant 0 : i32
    return %arg0, %c0_i32 : i32, i32
  }
  func.func @transform_1(%arg0: i32, %arg1: i32) -> (i32, i32) {
    %c0_i32 = arith.constant 0 : i32
    %c0_i32_0 = arith.constant 0 : i32
    return %c0_i32, %arg1 : i32, i32
  }
  func.func @transform_2(%arg0: i32, %arg1: i32) -> (i32, i32) {
    %c0_i32 = arith.constant 0 : i32
    %c0_i32_0 = arith.constant 0 : i32
    return %c0_i32, %arg1 : i32, i32
  }
  func.func @transform_3(%arg0: i32, %arg1: i32) -> (i32, i32) {
    %c0_i32 = arith.constant 0 : i32
    %c0_i32_0 = arith.constant 0 : i32
    return %c0_i32, %arg1 : i32, i32
  }
  func.func @transform_4(%arg0: i32, %arg1: i32) -> (i32, i32) {
    %c0_i32 = arith.constant 0 : i32
    %c0_i32_0 = arith.constant 0 : i32
    return %c0_i32, %arg1 : i32, i32
  }
  func.func @transform_5(%arg0: i32, %arg1: i32) -> (i32, i32) {
    %c0_i32 = arith.constant 0 : i32
    return %arg0, %arg1 : i32, i32
  }
}

</mosaic_0001>

<bundles_post_ra>
// kernel: tpu_custom_call.1
= control target key start
LH: loop header
LB: loop body
LE: loop exit
PB: predicated region body
PF: predicated region fallthrough
CT: control target
= control target key end

     0   :  { %10 = vsyncpa [#allocation3], 0  ;;  %s458_s0 = inlined_call_operand.hbm [shape: f32[16,32], index: 0, kind: input, shape index: {}]   ;;  %s459_s1 = inlined_call_operand.hbm [shape: f32[32,128], index: 1, kind: input, shape index: {}]   ;;  %s460_s2 = inlined_call_operand.hbm [shape: f32[32,128], index: 2, kind: input, shape index: {}]   ;;  %s461_s3 = inlined_call_operand.vmem [shape: f32[1,128], index: 3, kind: input, shape index: {}]   ;;  %s462_s4 = inlined_call_operand.vmem [shape: f32[1,128], index: 4, kind: input, shape index: {}]   ;;  %s463_s5 = inlined_call_operand.hbm [shape: f32[16,128], index: 5, kind: output, shape index: {}]  }
   0x1   :  { %11 = vsyncpa [#allocation6], 0 }
   0x2   :  { %12 = vsyncpa [#allocation4], 0  ;;  %s30_s20 = sshll.u32 %s459_s1, 4  ;;  %s379_s21 = smov [#allocation5]   ;;  %s31_s20 = int_to_ptr.hbm [resolvable:$true] %s30_s20 }
   0x3   :  { %s32_s22 = sshll.u32 %s379_s21, 4  ;;  %s17_s25 = sshll.u32 %s458_s0, 4  ;;  %s33_s22 = int_to_ptr.vmem [resolvable:$true] %s32_s22  ;;  %s18_s25 = int_to_ptr.hbm [resolvable:$true] %s17_s25 }
   0x4   :  { %s380_s26 = smov 128   ;;  %s381_s27 = smov 8  }
   0x5   :  { %38 = dma.hbm_to_vmem [thread:$0]  %s31_s20, 512, %s33_s22, [#allocation6], %s380_s26, %s380_s26, %s381_s27  }
   0x6   :  { %s382_s28 = smov [#allocation2]   ;;  %s43_s1 = sshll.u32 %s460_s2, 4  ;;  %s44_s1 = int_to_ptr.hbm [resolvable:$true] %s43_s1 }
   0x7   :  { %s19_s29 = sshll.u32 %s382_s28, 4  ;;  %s383_s0 = smov [#allocation7]   ;;  %s20_s29 = int_to_ptr.vmem [resolvable:$true] %s19_s29 }
   0x8   :  { %25 = dma.hbm_to_vmem [thread:$0]  %s18_s25, 256, %s20_s29, [#allocation3], %s380_s26, %s380_s26, %s381_s27  }
   0x9   :  { %s45_s7 = sshll.u32 %s383_s0, 4  ;;  %s46_s7 = int_to_ptr.vmem [resolvable:$true] %s45_s7 }
   0xa   :  { %51 = dma.hbm_to_vmem [thread:$0]  %s44_s1, 512, %s46_s7, [#allocation6], %s380_s26, %s380_s26, %s381_s27  }
   0xb   :  { %373 = dma.done.wait [#allocation3], 256  }
   0xc   :  { %374 = vsyncadd [#allocation3], 4294967040 }
   0xd   :  { %375 = dma.done.wait [#allocation6], 1024  }
   0xe   :  { %376 = vsyncadd [#allocation6], 4294966272  ;;  %v111_v0 = vld [vmem:[#allocation7 + $0x18] sm:$0xff]  ;;  %v110_v1 = vld [vmem:[#allocation7 + $0x10] sm:$0xff]  ;;  %vm78_vm0 = vcmask 261120   ;;  %s237_s13 = sshll.u32 %s463_s5, 4  ;;  %s238_s13 = int_to_ptr.hbm [resolvable:$true] %s237_s13 }
   0xf   :  { %128 = vmatpush.msra.mxu1 %v111_v0  ;;  %261 = vmatpush.msra.mxu3 %v111_v0  ;;  %v109_v2 = vld [vmem:[#allocation7 + $0x8] sm:$0xff]  ;;  %v73_v3 = vld [vmem:[#allocation5 + $0x18] sm:$0xff]  ;;  %v72_v4 = vld [vmem:[#allocation5 + $0x10] sm:$0xff] }
  0x10   :  { %v108_v5 = vld [vmem:[#allocation7] sm:$0xff]  ;;  %97 = vmatpush.msra.mxu0 %v73_v3  ;;  %257 = vmatpush.msra.mxu2 %v73_v3  ;;  %v68_v6 = vld [vmem:[#allocation2] sm:$0xff]  ;;  %v69_v7 = vld [vmem:[#allocation2 + $0x8] sm:$0xff] }
  0x11   :  { %129 = vmatpush.msra.mxu1 %v110_v1  ;;  %262 = vmatpush.msra.mxu3 %v110_v1  ;;  %v71_v8 = vld [vmem:[#allocation5 + $0x8] sm:$0xff]  ;;  %v70_v9 = vld [vmem:[#allocation5] sm:$0xff]  ;;  %v271_v10 = vld [vmem:[%s462_s4] ss:$0 sm:$0xff] }
  0x12   :  { %98 = vmatpush.msra.mxu0 %v72_v4  ;;  %258 = vmatpush.msra.mxu2 %v72_v4 }
  0x13   :  { %130 = vmatpush.msra.mxu1 %v109_v2  ;;  %263 = vmatpush.msra.mxu3 %v109_v2 }
  0x14   :  { %99 = vmatpush.msra.mxu0 %v71_v8  ;;  %259 = vmatpush.msra.mxu2 %v71_v8 }
  0x15   :  { %131 = vmatpush.msra.mxu1 %v108_v5  ;;  %264 = vmatpush.msra.mxu3 %v108_v5 }
  0x16   :  { %253 = vmatmul.msk.f32.vlgmr.msra.gmra.mxu1 %vm78_vm0, %v68_v6  ;;  %254 = vmatmul.msk.f32.vlgmr.msra.gmra.mxu3 %vm78_vm0, %v69_v7 }
  0x17   :  { %100 = vmatpush.msra.mxu0 %v70_v9  ;;  %260 = vmatpush.msra.mxu2 %v70_v9 }
  0x18   :  { %251 = vmatmul.msk.f32.vlgmr.msra.gmra.mxu0 %vm78_vm0, %v68_v6  ;;  %252 = vmatmul.msk.f32.vlgmr.msra.gmra.mxu2 %vm78_vm0, %v69_v7 }
  0x93   :  { %v133_v11 = vpop.f32.mrf.mxu1 }
  0x94   :  { %v436_v12 = vadd.f32 %v271_v10, %v133_v11 }
  0x96   :  { %v141_v13 = vmul.f32 0.70710677, %v436_v12 }
  0x98   :  { %v143_v14 = vmul.f32 %v141_v13, %v141_v13 }
  0x99   :  { %v136_v15 = vpop.f32.mrf.mxu3 }
  0x9a   :  { %v144_v16 = vmin.f32 %v143_v14, 16.0  ;;  %v439_v17 = vadd.f32 %v271_v10, %v136_v15  ;;  %v272_v14 = vld [vmem:[%s461_s3] ss:$0 sm:$0xff]  ;;  %s384_s3 = smov [#allocation8]  }
  0x9b   :  { %s235_s10 = sshll.u32 %s384_s3, 4  ;;  %s236_s10 = int_to_ptr.vmem [resolvable:$true] %s235_s10 }
  0x9c   :  { %v145_v18 = vmul.f32 2.1237322e-06, %v144_v16  ;;  %v156_v19 = vmul.f32 3.8918573e-05, %v144_v16  ;;  %v442_v20 = vmul.f32 0.70710677, %v439_v17 }
  0x9e   :  { %v146_v21 = vadd.f32 0.00028619796, %v145_v18  ;;  %v157_v22 = vadd.f32 0.001143296, %v156_v19  ;;  %v183_v23 = vmul.f32 %v442_v20, %v442_v20  ;;  %v102_v19 = vpop.f32.mrf.mxu0 }
  0xa0   :  { %v147_v24 = vmul.f32 %v146_v21, %v144_v16  ;;  %v158_v25 = vmul.f32 %v157_v22, %v144_v16  ;;  %v184_v26 = vmin.f32 %v183_v23, 16.0 }
  0xa2   :  { %v159_v27 = vadd.f32 0.014752088, %v158_v25  ;;  %v148_v28 = vadd.f32 0.0036580483, %v147_v24  ;;  %v185_v29 = vmul.f32 2.1237322e-06, %v184_v26  ;;  %v103_v24 = vadd.f32 %v272_v14, %v102_v19 }
  0xa3   :  { %v196_v30 = vmul.f32 3.8918573e-05, %v184_v26 }
  0xa4   :  { %v160_v31 = vmul.f32 %v159_v27, %v144_v16  ;;  %v186_v32 = vadd.f32 0.00028619796, %v185_v29  ;;  %v149_v35 = vmul.f32 %v148_v28, %v144_v16 }
  0xa5   :  { %v197_v33 = vadd.f32 0.001143296, %v196_v30 }
  0xa6   :  { %v161_v34 = vadd.f32 0.112945676, %v160_v31  ;;  %v187_v36 = vmul.f32 %v186_v32, %v184_v26  ;;  %v150_v42 = vadd.f32 0.05243302, %v149_v35  ;;  %v105_v32 = vpop.f32.mrf.mxu2 }
  0xa7   :  { %v198_v37 = vmul.f32 %v197_v33, %v184_v26  ;;  %v106_v35 = vadd.f32 %v272_v14, %v105_v32 }
  0xa8   :  { %v162_v38 = vmul.f32 %v161_v34, %v144_v16  ;;  %v188_v41 = vadd.f32 0.0036580483, %v187_v36  ;;  %v151_v48 = vmul.f32 %v150_v42, %v144_v16  ;;  %v140_v34 = vmul.f32 0.5, %v439_v17 }
  0xa9   :  { %v199_v39 = vadd.f32 0.014752088, %v198_v37 }
  0xaa   :  { %v163_v40 = vadd.f32 0.4994258, %v162_v38  ;;  %v189_v47 = vmul.f32 %v188_v41, %v184_v26  ;;  %v152_v52 = vadd.f32 0.18741608, %v151_v48 }
  0xab   :  { %v200_v43 = vmul.f32 %v199_v39, %v184_v26 }
  0xac   :  { %v164_v44 = vmul.f32 %v163_v40, %v144_v16  ;;  %v190_v51 = vadd.f32 0.05243302, %v189_v47  ;;  %v153_v57 = vmul.f32 %v152_v52, %v144_v16 }
  0xad   :  { %v201_v45 = vadd.f32 0.112945676, %v200_v43 }
  0xae   :  { %v165_v46 = vadd.f32 1.0, %v164_v44  ;;  %v191_v56 = vmul.f32 %v190_v51, %v184_v26  ;;  %v154_v62 = vadd.f32 1.1283791, %v153_v57 }
  0xaf   :  { %v202_v49 = vmul.f32 %v201_v45, %v184_v26 }
  0xb0   :  { %273 = vrcp.f32 %v165_v46  ;;  %v177_v60 = vand.u32 2147483648, %v165_v46  ;;  %v192_v61 = vadd.f32 0.18741608, %v191_v56  ;;  %v175_v0 = vand.u32 2147483647, %v165_v46 }
  0xb1   :  { %v203_v50 = vadd.f32 0.4994258, %v202_v49  ;;  %vm171_vm2 = vweird.f32 %v165_v46  ;;  %v155_v6 = vmul.f32 %v154_v62, %v141_v13  ;;  %v139_v13 = vmul.f32 0.5, %v436_v12 }
  0xb2   :  { %v178_v3 = vor.u32 1.1754944e-38, %v177_v60  ;;  %v193_v4 = vmul.f32 %v192_v61, %v184_v26  ;;  %vm176_vm4 = vcmp.eq.f32.partialorder %v175_v0, 8.507059e+37 }
  0xb3   :  { %v204_v53 = vmul.f32 %v203_v50, %v184_v26 }
  0xb4   :  { %v194_v15 = vadd.f32 1.1283791, %v193_v4 }
  0xb5   :  { %v205_v54 = vadd.f32 1.0, %v204_v53 }
  0xb6   :  { %v274_v55 = vpop.eup %273  ;;  %v195_v26 = vmul.f32 %v194_v15, %v442_v20 }
  0xb7   :  { %v167_v58 = vmul.f32 %v274_v55, %v165_v46  ;;  %275 = vrcp.f32 %v205_v54  ;;  %vm172_vm1 = vweird.f32 %v274_v55  ;;  %v217_v11 = vand.u32 2147483648, %v205_v54 }
  0xb8   :  { %vm173_vm3 = vmor %vm171_vm2, %vm172_vm1  ;;  %v215_v18 = vand.u32 2147483647, %v205_v54  ;;  %vm211_vm6 = vweird.f32 %v205_v54 }
  0xb9   :  { %v168_v59 = vsub.f32 1.0, %v167_v58  ;;  %v218_v23 = vor.u32 1.1754944e-38, %v217_v11 }
  0xba   :  { %vm216_vm8 = vcmp.eq.f32.partialorder %v215_v18, 8.507059e+37 }
  0xbb   :  { %v169_v63 = vmul.f32 %v274_v55, %v168_v59 }
  0xbd   :  { %v276_v1 = vpop.eup %275  ;;  %v170_v2 = vadd.f32 %v274_v55, %v169_v63 }
  0xbe   :  { %v207_v5 = vmul.f32 %v276_v1, %v205_v54  ;;  %vm212_vm5 = vweird.f32 %v276_v1 }
  0xbf   :  { %v174_v7 = vsel %vm173_vm3, %v274_v55, %v170_v2  ;;  %vm213_vm7 = vmor %vm211_vm6, %vm212_vm5 }
  0xc0   :  { %v179_v8 = vsel %vm176_vm4, %v178_v3, %v174_v7  ;;  %v208_v9 = vsub.f32 1.0, %v207_v5 }
  0xc1   :  { %v180_v10 = vmul.f32 %v179_v8, %v155_v6 }
  0xc2   :  { %v209_v16 = vmul.f32 %v276_v1, %v208_v9 }
  0xc3   :  { %v255_v21 = vclamps-f32 %v180_v10, 1.0 }
  0xc4   :  { %v210_v22 = vadd.f32 %v276_v1, %v209_v16 }
  0xc5   :  { %v223_v25 = vadd.f32 1.0, %v255_v21 }
  0xc6   :  { %v214_v27 = vsel %vm213_vm7, %v276_v1, %v210_v22 }
  0xc7   :  { %v219_v28 = vsel %vm216_vm8, %v218_v23, %v214_v27  ;;  %v225_v29 = vmul.f32 %v223_v25, %v139_v13 }
  0xc8   :  { %v220_v30 = vmul.f32 %v219_v28, %v195_v26 }
  0xc9   :  { %v227_v31 = vmul.f32 %v225_v29, %v103_v24 }
  0xca   :  { %v256_v33 = vclamps-f32 %v220_v30, 1.0 }
  0xcb   :  { %229 = vst [vmem:[#allocation8] sm:$0xff] %v227_v31 }
  0xcc   :  { %v224_v36 = vadd.f32 1.0, %v256_v33 }
  0xce   :  { %v226_v12 = vmul.f32 %v224_v36, %v140_v34 }
  0xd0   :  { %v228_v20 = vmul.f32 %v226_v12, %v106_v35 }
  0xd2   :  { %230 = vst [vmem:[#allocation8 + $0x8] sm:$0xff] %v228_v20 }
  0xd3   :  { %243 = dma.vmem_to_hbm [thread:$0]  %s236_s10, 256, %s238_s13, [#allocation4], %s380_s26, %s380_s26, %s381_s27  }
  0xd4   :  { %377 = dma.done.wait [#allocation4], 256  }
  0xd5   :  { %378 = vsyncadd [#allocation4], 4294967040 }
  0xd6   :  { %248 = vsyncpa [#allocation3], 1 }
  0xd7   :  { %249 = vsyncpa [#allocation6], 1 }
  0xd8   :  { %250 = vsyncpa [#allocation4], 1 }

</bundles_post_ra>
